<compile_context>
chip_gen: v7x
topology: tpu7x:2x2x1
jax: 0.10.0
libtpu: 0.0.40
codegen_flags: <defaults>
</compile_context>

<pallas_src>
import jax
import jax.numpy as jnp
from jax.experimental import pallas as pl
from jax.experimental.pallas import tpu as pltpu


_LANE = 128


def _round_up(n: int, m: int) -> int:
    return ((n + m - 1) // m) * m


def _vmem_capacity_bytes() -> int:
    """Per-core VMEM capacity; conservative 64 MiB (v7x) fallback."""
    try:
        info = pltpu.get_tpu_info()
        cap = getattr(info, "vmem_capacity_bytes", None)
        if cap:
            return int(cap)
    except Exception:
        pass
    return 64 << 20


def _make_svd_kernel(ut_resident: bool):
    """Kernel for one (tm, tn) output tile.

    x_ref : [tm, in_p]            activation row tile
    v_ref : [in_p, rank_p]        (Vt * S).T, constant block (resident)
    ut_ref: [J, rank_p, tn] if resident else [1, rank_p, tn]   U.T tiles
    b_ref : [J, 1, tn]      if resident else [1, 1, tn]        bias tiles
    o_ref : [tm, tn]              output tile
    t_ref : [tm, rank_p] f32      cached rank projection (scratch)
    """

    def kernel(x_ref, v_ref, ut_ref, b_ref, o_ref, t_ref):
        j = pl.program_id(1)

        # Rank projection computed once per row tile and reused for all j.
        @pl.when(j == 0)
        def _():
            t_ref[...] = jnp.dot(x_ref[...], v_ref[...],
                                 preferred_element_type=jnp.float32)

        idx = j if ut_resident else 0
        ut = ut_ref[idx]            # [rank_p, tn]
        b = b_ref[idx]              # [1, tn]

        y = jnp.dot(t_ref[...].astype(ut.dtype), ut,
                    preferred_element_type=jnp.float32)
        o_ref[...] = (y + b.astype(jnp.float32)).astype(o_ref.dtype)

    return kernel


def prepare_svd_params(U, S, Vt, bias=None, *, tn=512, compute_dtype=None):
    """One-time weight prep (fold S, transpose, pad, retile). Hoist out of the
    per-forward path and reuse the returned dict across calls."""
    out_features, _ = U.shape
    rank = S.shape[0]
    in_features = Vt.shape[1]
    w_dtype = jnp.dtype(compute_dtype) if compute_dtype is not None else jnp.dtype(U.dtype)

    # Fold S into the right factor (one fewer operand / no per-tile VPU mul).
    V = (Vt.astype(jnp.float32) * S.astype(jnp.float32)[:, None]).T   # [in, rank]
    Ut = U.astype(jnp.float32).T                                      # [rank, out]
    if bias is None:
        bias = jnp.zeros((out_features,), dtype=jnp.float32)

    in_p = _round_up(in_features, _LANE)
    rank_p = _round_up(rank, _LANE)
    out_p = _round_up(out_features, _LANE)

    # Output-feature tile: largest of {512,384,256,128} (<= tn) dividing out_p,
    # so no fully-padded output tile is ever computed or written back.
    tn_eff = 128
    for cand in (512, 384, 256, 128):
        if cand <= max(int(tn), 128) and out_p % cand == 0:
            tn_eff = cand
            break
    num_j = out_p // tn_eff

    V_p = jnp.pad(V, ((0, in_p - in_features), (0, rank_p - rank))).astype(w_dtype)
    Ut_p = jnp.pad(Ut, ((0, rank_p - rank), (0, out_p - out_features))).astype(w_dtype)
    b_p = jnp.pad(bias.reshape(1, out_features).astype(jnp.float32),
                  ((0, 0), (0, out_p - out_features)))

    # Retile U.T / bias with the output-tile axis leading: [J, rank_p, tn].
    Ut_b = Ut_p.reshape(rank_p, num_j, tn_eff).transpose(1, 0, 2)
    b_b = b_p.reshape(num_j, 1, tn_eff)

    return {
        "V_p": V_p, "Ut_b": Ut_b, "b_b": b_b,
        "in_features": in_features, "out_features": out_features, "rank": rank,
        "in_p": in_p, "rank_p": rank_p, "out_p": out_p,
        "tn_eff": tn_eff, "num_j": num_j, "compute_dtype": w_dtype,
    }


def svd_layer_apply(x, params, *, tm=None):
    """Apply the SVD-decomposed linear layer (prepared params) to x[..., in]."""
    orig_shape = x.shape
    in_features = params["in_features"]
    out_features = params["out_features"]
    rank = params["rank"]
    in_p, rank_p, out_p = params["in_p"], params["rank_p"], params["out_p"]
    tn_eff, num_j = params["tn_eff"], params["num_j"]
    V_p, Ut_b, b_b = params["V_p"], params["Ut_b"], params["b_b"]
    w_dtype = params["compute_dtype"]

    out_dtype = x.dtype
    x2d = x.reshape(-1, in_features)
    if x2d.dtype != w_dtype:
        x2d = x2d.astype(w_dtype)
    M = x2d.shape[0]

    isz_x = jnp.dtype(x2d.dtype).itemsize
    isz_w = jnp.dtype(w_dtype).itemsize
    isz_o = jnp.dtype(out_dtype).itemsize

    vmem_cap = _vmem_capacity_bytes()

    # Keep U.T fully VMEM-resident when cheap (typical for low-rank layers);
    # otherwise stream one [rank_p, tn] slice per j step.
    ut_resident = (rank_p * out_p * isz_w) <= (8 << 20)

    def vmem_need(tm_):
        ut_cols = out_p if ut_resident else tn_eff
        return (
            2 * tm_ * in_p * isz_x                 # double-buffered x tiles
            + 2 * tm_ * tn_eff * isz_o             # double-buffered output tiles
            + 2 * in_p * rank_p * isz_w            # resident V block
            + 2 * rank_p * ut_cols * isz_w         # U.T (resident or streamed)
            + 2 * 8 * ut_cols * 4                  # bias (sublane-padded)
            + tm_ * rank_p * 4                     # t scratch (f32)
        )

    # Row tile: chip-dependent default, shrunk until the working set fits.
    if tm is None:
        tm = 512 if vmem_cap >= (100 << 20) else 256
    tm_eff = max(8, _round_up(min(int(tm), _round_up(max(M, 1), 8)), 8))
    budget = max(vmem_cap - (16 << 20), 16 << 20)
    while vmem_need(tm_eff) > budget and tm_eff > 8:
        tm_eff = max(8, _round_up(tm_eff // 2, 8))
    # TODO(synk): when huge in_features still dominates, K-split with a rank
    # accumulator instead of shrinking tm further.

    M_p = _round_up(max(M, 1), tm_eff)
    if (M_p != M) or (in_p != in_features):
        x_p = jnp.pad(x2d, ((0, M_p - M), (0, in_p - in_features)))
    else:
        x_p = x2d

    if ut_resident:
        ut_spec = pl.BlockSpec((num_j, rank_p, tn_eff), lambda i, j: (0, 0, 0))
        b_spec = pl.BlockSpec((num_j, 1, tn_eff), lambda i, j: (0, 0, 0))
    else:
        ut_spec = pl.BlockSpec((1, rank_p, tn_eff), lambda i, j: (j, 0, 0))
        b_spec = pl.BlockSpec((1, 1, tn_eff), lambda i, j: (j, 0, 0))

    vmem_limit = int(min(max(vmem_need(tm_eff) + (4 << 20), 32 << 20),
                         vmem_cap - (8 << 20)))

    cost = pl.CostEstimate(
        flops=2 * M * in_features * rank + 2 * M * rank * out_features,
        transcendentals=0,
        bytes_accessed=(x2d.size * isz_x + V_p.size * isz_w + Ut_b.size * isz_w
                        + b_b.size * 4 + M * out_features * isz_o),
    )

    out2d = pl.pallas_call(
        _make_svd_kernel(ut_resident),
        out_shape=jax.ShapeDtypeStruct((M_p, out_p), out_dtype),
        grid_spec=pltpu.PrefetchScalarGridSpec(
            num_scalar_prefetch=0,
            grid=(M_p // tm_eff, num_j),
            in_specs=[
                pl.BlockSpec((tm_eff, in_p), lambda i, j: (i, 0)),   # x row tile
                pl.BlockSpec((in_p, rank_p), lambda i, j: (0, 0)),   # V resident
                ut_spec,                                             # U.T tiles
                b_spec,                                              # bias tiles
            ],
            out_specs=pl.BlockSpec((tm_eff, tn_eff), lambda i, j: (i, j)),
            scratch_shapes=[pltpu.VMEM((tm_eff, rank_p), jnp.float32)],
        ),
        compiler_params=pltpu.CompilerParams(
            # Rows shard across TensorCores; the output-column axis must stay
            # sequential ("arbitrary") so the cached rank projection is reused.
            dimension_semantics=("parallel", "arbitrary"),
            vmem_limit_bytes=vmem_limit,
        ),
        cost_estimate=cost,
    )(x_p, V_p, Ut_b, b_b)

    out = out2d[:M, :out_features]
    return out.reshape(*orig_shape[:-1], out_features)


def svd_layer_forward(x, U, S, Vt, bias=None, *, tm=None, tn=512, compute_dtype=None):
    """Convenience wrapper: prepare params + apply (prefer hoisting prepare)."""
    params = prepare_svd_params(U, S, Vt, bias, tn=tn, compute_dtype=compute_dtype)
    return svd_layer_apply(x, params, tm=tm)


def make_svd_params(key, out_features, in_features, rank, dtype=jnp.float32):
    """Build U, S, Vt, bias via SVD of a random weight (plain JAX setup glue)."""
    kw, kb = jax.random.split(key)
    W = jax.random.normal(kw, (out_features, in_features), dtype=jnp.float32)
    bias = jax.random.normal(kb, (out_features,), dtype=jnp.float32)
    U, S, Vt = jnp.linalg.svd(W, full_matrices=False)
    rank = min(rank, min(out_features, in_features))
    U = U[:, :rank].astype(dtype)
    S = S[:rank].astype(dtype)
    Vt = Vt[:rank, :].astype(dtype)
    return U, S, Vt, bias.astype(dtype)


if __name__ == "__main__":
    key = jax.random.PRNGKey(0)
    k_x, k_p, k_x2, k_p2 = jax.random.split(key, 4)

    # Case 1: 3-D input flattened to 2-D (batch=2, seq=8, hidden=32, rank=8).
    batch, seq, in_features = 2, 8, 32
    out_features, rank = 32, 8
    x = jax.random.normal(k_x, (batch, seq, in_features), dtype=jnp.float32)
    U, S, Vt, bias = make_svd_params(k_p, out_features, in_features, rank)

    y = jax.block_until_ready(svd_layer_forward(x, U, S, Vt, bias))

    x2d = x.reshape(-1, in_features)
    y_ref = (((x2d @ Vt.T) * S[None, :]) @ U.T + bias[None, :]).reshape(
        batch, seq, out_features)
    assert y.shape == (batch, seq, out_features)
    assert jnp.allclose(y, y_ref, atol=2e-4, rtol=1e-4)

    # Case 2: 2-D input, awkward (non-128-multiple) features, no bias.
    batch2, in2, out2, rank2 = 3, 40, 48, 5
    x2 = jax.random.normal(k_x2, (batch2, in2), dtype=jnp.float32)
    U2, S2, Vt2, _ = make_svd_params(k_p2, out2, in2, rank2)
    y2 = jax.block_until_ready(svd_layer_forward(x2, U2, S2, Vt2, None))
    y2_ref = ((x2 @ Vt2.T) * S2[None, :]) @ U2.T
    assert y2.shape == (batch2, out2)
    assert jnp.allclose(y2, y2_ref, atol=2e-4, rtol=1e-4)

    print("KERNEL_OK")
</pallas_src>

<mosaic_0001>
module attributes {stable_mosaic.version = 11 : i64} {
  func.func @kernel(%arg0: i32, %arg1: i32, %arg2: memref<16x128xf32, #tpu.memory_space<vmem>>, %arg3: memref<128x128xf32, #tpu.memory_space<vmem>>, %arg4: memref<1x128x128xf32, #tpu.memory_space<vmem>>, %arg5: memref<1x1x128xf32, #tpu.memory_space<vmem>>, %arg6: memref<16x128xf32, #tpu.memory_space<vmem>>, %arg7: memref<16x128xf32, #tpu.memory_space<vmem>>) attributes {dimension_semantics = [#tpu.dimension_semantics<parallel>, #tpu.dimension_semantics<arbitrary>], iteration_bounds = array<i64: 1, 1>, scalar_prefetch = 0 : i64, scratch_operands = 1 : i64, tpu.core_type = #tpu.core_type<tc>, window_params = [{transform_indices = @transform_0, window_bounds = array<i64: 16, 128>}, {pipeline_mode = #tpu.pipeline_mode<synchronous>, transform_indices = @transform_1, window_bounds = array<i64: 128, 128>}, {pipeline_mode = #tpu.pipeline_mode<synchronous>, transform_indices = @transform_2, window_bounds = array<i64: 1, 128, 128>}, {pipeline_mode = #tpu.pipeline_mode<synchronous>, transform_indices = @transform_3, window_bounds = array<i64: 1, 1, 128>}, {transform_indices = @transform_4, window_bounds = array<i64: 16, 128>}]} {
    %c0_i32 = arith.constant 0 : i32
    %0 = arith.cmpi eq, %arg1, %c0_i32 : i32
    %1 = arith.extui %0 : i1 to i32
    %c0_i32_0 = arith.constant 0 : i32
    %2 = arith.cmpi ne, %1, %c0_i32_0 : i32
    scf.if %2 {
      %c0_8 = arith.constant 0 : index
      %c0_9 = arith.constant 0 : index
      %14 = vector.load %arg2[%c0_8, %c0_9] : memref<16x128xf32, #tpu.memory_space<vmem>>, vector<16x128xf32>
      %c0_10 = arith.constant 0 : index
      %c0_11 = arith.constant 0 : index
      %15 = vector.load %arg3[%c0_10, %c0_11] : memref<128x128xf32, #tpu.memory_space<vmem>>, vector<128x128xf32>
      %cst_12 = arith.constant dense<0.000000e+00> : vector<16x128xf32>
      %16 = tpu.matmul %14, %15, %cst_12 {dimension_numbers = #tpu.dot_dimension_numbers<[1], [0], [0], [1], [0, 0, 1, 1], [], []>} : vector<16x128xf32>, vector<128x128xf32>, vector<16x128xf32> -> vector<16x128xf32>
      %c0_13 = arith.constant 0 : index
      %c0_14 = arith.constant 0 : index
      %17 = vector.load %arg7[%c0_13, %c0_14] : memref<16x128xf32, #tpu.memory_space<vmem>>, vector<16x128xf32>
      tpu.vector_store %arg7[%c0_13, %c0_14], %16 {strides = array<i32>} : memref<16x128xf32, #tpu.memory_space<vmem>>, vector<16x128xf32>,
    } else {
    }
    %3 = arith.index_cast %arg1 : i32 to index
    %c0 = arith.constant 0 : index
    %c0_1 = arith.constant 0 : index
    %4 = vector.load %arg4[%3, %c0, %c0_1] : memref<1x128x128xf32, #tpu.memory_space<vmem>>, vector<1x128x128xf32>
    %5 = vector.shape_cast %4 : vector<1x128x128xf32> to vector<128x128xf32>
    %6 = arith.index_cast %arg1 : i32 to index
    %c0_2 = arith.constant 0 : index
    %c0_3 = arith.constant 0 : index
    %7 = vector.load %arg5[%6, %c0_2, %c0_3] : memref<1x1x128xf32, #tpu.memory_space<vmem>>, vector<1x1x128xf32>
    %8 = vector.shape_cast %7 : vector<1x1x128xf32> to vector<1x128xf32>
    %c0_4 = arith.constant 0 : index
    %c0_5 = arith.constant 0 : index
    %9 = vector.load %arg7[%c0_4, %c0_5] : memref<16x128xf32, #tpu.memory_space<vmem>>, vector<16x128xf32>
    %cst = arith.constant dense<0.000000e+00> : vector<16x128xf32>
    %10 = tpu.matmul %9, %5, %cst {dimension_numbers = #tpu.dot_dimension_numbers<[1], [0], [0], [1], [0, 0, 1, 1], [], []>} : vector<16x128xf32>, vector<128x128xf32>, vector<16x128xf32> -> vector<16x128xf32>
    %11 = vector.broadcast %8 : vector<1x128xf32> to vector<16x128xf32>
    %12 = arith.addf %10, %11 : vector<16x128xf32>
    %c0_6 = arith.constant 0 : index
    %c0_7 = arith.constant 0 : index
    %13 = vector.load %arg6[%c0_6, %c0_7] : memref<16x128xf32, #tpu.memory_space<vmem>>, vector<16x128xf32>
    tpu.vector_store %arg6[%c0_6, %c0_7], %12 {strides = array<i32>} : memref<16x128xf32, #tpu.memory_space<vmem>>, vector<16x128xf32>,
    return
  }
  func.func @transform_0(%arg0: i32, %arg1: i32) -> (i32, i32) {
    %c0_i32 = arith.constant 0 : i32
    %c0_i32_0 = arith.constant 0 : i32
    return %arg0, %c0_i32 : i32, i32
  }
  func.func @transform_1(%arg0: i32, %arg1: i32) -> (i32, i32) {
    %c0_i32 = arith.constant 0 : i32
    %c0_i32_0 = arith.constant 0 : i32
    %c0_i32_1 = arith.constant 0 : i32
    return %c0_i32, %c0_i32_0 : i32, i32
  }
  func.func @transform_2(%arg0: i32, %arg1: i32) -> (i32, i32, i32) {
    %c0_i32 = arith.constant 0 : i32
    %c0_i32_0 = arith.constant 0 : i32
    %c0_i32_1 = arith.constant 0 : i32
    %c0_i32_2 = arith.constant 0 : i32
    return %c0_i32, %c0_i32_0, %c0_i32_1 : i32, i32, i32
  }
  func.func @transform_3(%arg0: i32, %arg1: i32) -> (i32, i32, i32) {
    %c0_i32 = arith.constant 0 : i32
    %c0_i32_0 = arith.constant 0 : i32
    %c0_i32_1 = arith.constant 0 : i32
    %c0_i32_2 = arith.constant 0 : i32
    return %c0_i32, %c0_i32_0, %c0_i32_1 : i32, i32, i32
  }
  func.func @transform_4(%arg0: i32, %arg1: i32) -> (i32, i32) {
    %c0_i32 = arith.constant 0 : i32
    return %arg0, %arg1 : i32, i32
  }
}

</mosaic_0001>

<bundles_post_ra>
// kernel: tpu_custom_call.1
= control target key start
LH: loop header
LB: loop body
LE: loop exit
PB: predicated region body
PF: predicated region fallthrough
CT: control target
= control target key end

     0   :  { %9 = vsyncpa [#allocation4], 0  ;;  %s652_s0 = inlined_call_operand.hbm [shape: f32[16,128], index: 0, kind: input, shape index: {}]   ;;  %s653_s1 = inlined_call_operand.hbm [shape: f32[128,128], index: 1, kind: input, shape index: {}]   ;;  %s654_s2 = inlined_call_operand.hbm [shape: f32[1,128,128], index: 2, kind: input, shape index: {}]   ;;  %s655_s3 = inlined_call_operand.vmem [shape: f32[1,1,128], index: 3, kind: input, shape index: {}]   ;;  %s656_s4 = inlined_call_operand.hbm [shape: f32[16,128], index: 4, kind: output, shape index: {}]  }
   0x1   :  { %10 = vsyncpa [#allocation7], 0 }
   0x2   :  { %11 = vsyncpa [#allocation5], 0  ;;  %s551_s15 = smov [#allocation6]   ;;  %s552_s17 = smov [#allocation3]  }
   0x3   :  { %s29_s16 = sshll.u32 %s551_s15, 4  ;;  %s17_s18 = sshll.u32 %s552_s17, 4  ;;  %s30_s16 = int_to_ptr.vmem [resolvable:$true] %s29_s16  ;;  %s582_s18 = int_to_ptr.vmem [resolvable:$true] %s17_s18 }
   0x4   :  { %s457_s21 = scalar_lea.hbm %s653_s1, 2048 }
   0x5   :  { %p458_p0 = scmp.ne.s32.totalorder %s653_s1, %s457_s21  ;;  %p461_p1 = scmp.lt.u32.totalorder %s457_s21, %s653_s1 }
   0x7   :  { %p463_p2 = pnand %p461_p1, %p458_p0 }
   0x9   :  { %466 = shalt.err (!%p463_p2)
}
   0xa   :  { %s467_s26 = scalar_lea.vmem %s30_s16, 2048  ;;  %p472_p4 = scmp.lt.s32.totalorder %s30_s16, %s30_s16 }
   0xb   :  { %p468_p3 = scmp.ne.s32.totalorder %s30_s16, %s467_s26  ;;  %p473_p5 = scmp.lt.s32.totalorder %s467_s26, %s467_s26 }
   0xd   :  { %p474_p6 = por %p473_p5, %p472_p4 }
   0xf   :  { %p475_p7 = pnand %p474_p6, %p468_p3 }
  0x11   :  { %478 = shalt.err (!%p475_p7)
}
  0x12   :  { %s553_s27 = smov 128   ;;  %s554_s28 = smov 8  }
  0x13   :  { %35 = dma.hbm_to_vmem [thread:$0]  %s653_s1, 2048, %s30_s16, [#allocation7], %s553_s27, %s553_s27, %s554_s28  }
  0x14   :  { %s479_s7 = scalar_lea.hbm %s652_s0, 256 }
  0x15   :  { %p480_p8 = scmp.ne.s32.totalorder %s652_s0, %s479_s7  ;;  %p483_p9 = scmp.lt.u32.totalorder %s479_s7, %s652_s0 }
  0x17   :  { %p485_p10 = pnand %p483_p9, %p480_p8 }
  0x19   :  { %488 = shalt.err (!%p485_p10)
}
  0x1a   :  { %s489_s12 = scalar_lea.vmem %s582_s18, 256  ;;  %p494_p12 = scmp.lt.s32.totalorder %s582_s18, %s582_s18 }
  0x1b   :  { %p490_p11 = scmp.ne.s32.totalorder %s582_s18, %s489_s12  ;;  %p495_p13 = scmp.lt.s32.totalorder %s489_s12, %s489_s12 }
  0x1d   :  { %p496_p0 = por %p495_p13, %p494_p12 }
  0x1f   :  { %p497_p1 = pnand %p496_p0, %p490_p11 }
  0x21   :  { %500 = shalt.err (!%p497_p1)
}
  0x22   :  { %23 = dma.hbm_to_vmem [thread:$0]  %s652_s0, 256, %s582_s18, [#allocation4], %s553_s27, %s553_s27, %s554_s28  }
  0x23   :  { %s555_s14 = smov [#allocation8]   ;;  %s501_s19 = scalar_lea.hbm %s654_s2, 2048 }
  0x24   :  { %s41_s15 = sshll.u32 %s555_s14, 4  ;;  %p502_p2 = scmp.ne.s32.totalorder %s654_s2, %s501_s19  ;;  %s42_s15 = int_to_ptr.vmem [resolvable:$true] %s41_s15 }
  0x25   :  { %p505_p3 = scmp.lt.u32.totalorder %s501_s19, %s654_s2 }
  0x27   :  { %p507_p4 = pnand %p505_p3, %p502_p2 }
  0x29   :  { %510 = shalt.err (!%p507_p4)
}
  0x2a   :  { %s511_s24 = scalar_lea.vmem %s42_s15, 2048  ;;  %p516_p6 = scmp.lt.s32.totalorder %s42_s15, %s42_s15 }
  0x2b   :  { %p512_p5 = scmp.ne.s32.totalorder %s42_s15, %s511_s24  ;;  %p517_p7 = scmp.lt.s32.totalorder %s511_s24, %s511_s24 }
  0x2d   :  { %p518_p8 = por %p517_p7, %p516_p6 }
  0x2f   :  { %p519_p9 = pnand %p518_p8, %p512_p5 }
  0x31   :  { %522 = shalt.err (!%p519_p9)
}
  0x32   :  { %47 = dma.hbm_to_vmem [thread:$0]  %s654_s2, 2048, %s42_s15, [#allocation7], %s553_s27, %s553_s27, %s554_s28  }
  0x33   :  { %545 = dma.done.wait [#allocation4], 256  }
  0x34   :  { %546 = vsyncadd [#allocation4], 4294967040 }
  0x35   :  { %547 = dma.done.wait [#allocation7], 4096  }
  0x36   :  { %548 = vsyncadd [#allocation7], 4294963200  ;;  %v65_v0 = vld [vmem:[#allocation6] sm:$0xff]  ;;  %v66_v1 = vld [vmem:[#allocation6 + $0x8] sm:$0xff]  ;;  %s556_s26 = smov [#allocation9]  }
  0x37   :  { %v67_v2 = vld [vmem:[#allocation6 + $0x10] sm:$0xff]  ;;  %v387_v3 = vpack.c.bf16 %v66_v1, %v65_v0  ;;  %v68_v4 = vld [vmem:[#allocation6 + $0x18] sm:$0xff]  ;;  %v69_v6 = vld [vmem:[#allocation6 + $0x20] sm:$0xff]  ;;  %s267_s29 = sshll.u32 %s556_s26, 4  ;;  %s268_s29 = int_to_ptr.vmem [resolvable:$true] %s267_s29 }
  0x38   :  { %v391_v5 = vpack.c.bf16 %v68_v4, %v67_v2  ;;  %v70_v7 = vld [vmem:[#allocation6 + $0x28] sm:$0xff]  ;;  %v71_v9 = vld [vmem:[#allocation6 + $0x30] sm:$0xff]  ;;  %v72_v10 = vld [vmem:[#allocation6 + $0x38] sm:$0xff]  ;;  %s523_s30 = scalar_lea.vmem %s268_s29, 256  ;;  %p528_p11 = scmp.lt.s32.totalorder %s268_s29, %s268_s29 }
  0x39   :  { %388 = vmatprep.subr.bf16.mxu0 %v387_v3  ;;  %v395_v8 = vpack.c.bf16 %v70_v7, %v69_v6  ;;  %v63_v11 = vld [vmem:[#allocation3] sm:$0xff]  ;;  %v160_v12 = vld [vmem:[#allocation8] sm:$0xff]  ;;  %v161_v13 = vld [vmem:[#allocation8 + $0x8] sm:$0xff]  ;;  %v399_v20 = vpack.c.bf16 %v72_v10, %v71_v9  ;;  %p524_p10 = scmp.ne.s32.totalorder %s268_s29, %s523_s30  ;;  %p529_p12 = scmp.lt.s32.totalorder %s523_s30, %s523_s30 }
  0x3a   :  { %390 = vmatpush3.bf16.msra.mxu0 %v387_v3  ;;  %349 = vmatprep.mubr.f32.mxu0 %v63_v11  ;;  %v162_v14 = vld [vmem:[#allocation8 + $0x10] sm:$0xff]  ;;  %v419_v15 = vpack.c.bf16 %v161_v13, %v160_v12  ;;  %v163_v16 = vld [vmem:[#allocation8 + $0x18] sm:$0xff]  ;;  %v164_v18 = vld [vmem:[#allocation8 + $0x20] sm:$0xff] }
  0x3b   :  { %392 = vmatprep.subr.bf16.mxu0 %v391_v5  ;;  %v423_v17 = vpack.c.bf16 %v163_v16, %v162_v14  ;;  %v165_v19 = vld [vmem:[#allocation8 + $0x28] sm:$0xff]  ;;  %v73_v21 = vld [vmem:[#allocation6 + $0x40] sm:$0xff]  ;;  %v166_v24 = vld [vmem:[#allocation8 + $0x30] sm:$0xff]  ;;  %p530_p13 = por %p529_p12, %p528_p11 }
  0x3c   :  { %420 = vmatprep.subr.bf16.mxu1 %v419_v15  ;;  %v74_v22 = vld [vmem:[#allocation6 + $0x48] sm:$0xff]  ;;  %v427_v23 = vpack.c.bf16 %v165_v19, %v164_v18  ;;  %v167_v25 = vld [vmem:[#allocation8 + $0x38] sm:$0xff]  ;;  %v75_v27 = vld [vmem:[#allocation6 + $0x50] sm:$0xff] }
  0x3d   :  { %422 = vmatpush3.bf16.msra.mxu1 %v419_v15  ;;  %v403_v26 = vpack.c.bf16 %v74_v22, %v73_v21  ;;  %v76_v28 = vld [vmem:[#allocation6 + $0x58] sm:$0xff]  ;;  %v431_v29 = vpack.c.bf16 %v167_v25, %v166_v24  ;;  %v168_v30 = vld [vmem:[#allocation8 + $0x40] sm:$0xff]  ;;  %v169_v31 = vld [vmem:[#allocation8 + $0x48] sm:$0xff]  ;;  %p531_p0 = pnand %p530_p13, %p524_p10 }
  0x3e   :  { %394 = vmatpush3.bf16.msra.mxu0 %v391_v5  ;;  %424 = vmatprep.subr.bf16.mxu1 %v423_v17  ;;  %v407_v32 = vpack.c.bf16 %v76_v28, %v75_v27  ;;  %v77_v33 = vld [vmem:[#allocation6 + $0x60] sm:$0xff]  ;;  %v78_v34 = vld [vmem:[#allocation6 + $0x68] sm:$0xff]  ;;  %v435_v35 = vpack.c.bf16 %v169_v31, %v168_v30  ;;  %v170_v36 = vld [vmem:[#allocation8 + $0x50] sm:$0xff] }
  0x3f   :  { %396 = vmatprep.subr.bf16.mxu0 %v395_v8  ;;  %v171_v37 = vld [vmem:[#allocation8 + $0x58] sm:$0xff]  ;;  %v411_v38 = vpack.c.bf16 %v78_v34, %v77_v33  ;;  %v79_v39 = vld [vmem:[#allocation6 + $0x70] sm:$0xff]  ;;  %v172_v42 = vld [vmem:[#allocation8 + $0x60] sm:$0xff] }
  0x40   :  { %v80_v40 = vld [vmem:[#allocation6 + $0x78] sm:$0xff]  ;;  %v439_v41 = vpack.c.bf16 %v171_v37, %v170_v36  ;;  %v173_v43 = vld [vmem:[#allocation8 + $0x68] sm:$0xff]  ;;  %v174_v46 = vld [vmem:[#allocation8 + $0x70] sm:$0xff] }
  0x41   :  { %426 = vmatpush3.bf16.msra.mxu1 %v423_v17  ;;  %v415_v44 = vpack.c.bf16 %v80_v40, %v79_v39  ;;  %v443_v45 = vpack.c.bf16 %v173_v43, %v172_v42  ;;  %v175_v47 = vld [vmem:[#allocation8 + $0x78] sm:$0xff]  ;;  %v280_v52 = vld [vmem:[%s655_s3] ss:$0 sm:$0xff] }
  0x42   :  { %398 = vmatpush3.bf16.msra.mxu0 %v395_v8  ;;  %428 = vmatprep.subr.bf16.mxu1 %v427_v23  ;;  %v447_v48 = vpack.c.bf16 %v175_v47, %v174_v46  ;;  %v64_v49 = vld [vmem:[#allocation3 + $0x8] sm:$0xff] }
  0x43   :  { %400 = vmatprep.subr.bf16.mxu0 %v399_v20 }
  0x45   :  { %430 = vmatpush3.bf16.msra.mxu1 %v427_v23 }
  0x46   :  { %402 = vmatpush3.bf16.msra.mxu0 %v399_v20  ;;  %432 = vmatprep.subr.bf16.mxu1 %v431_v29 }
  0x47   :  { %404 = vmatprep.subr.bf16.mxu0 %v403_v26 }
  0x49   :  { %434 = vmatpush3.bf16.msra.mxu1 %v431_v29 }
  0x4a   :  { %406 = vmatpush3.bf16.msra.mxu0 %v403_v26  ;;  %436 = vmatprep.subr.bf16.mxu1 %v435_v35 }
  0x4b   :  { %408 = vmatprep.subr.bf16.mxu0 %v407_v32 }
  0x4d   :  { %438 = vmatpush3.bf16.msra.mxu1 %v435_v35 }
  0x4e   :  { %410 = vmatpush3.bf16.msra.mxu0 %v407_v32  ;;  %440 = vmatprep.subr.bf16.mxu1 %v439_v41 }
  0x4f   :  { %412 = vmatprep.subr.bf16.mxu0 %v411_v38 }
  0x51   :  { %442 = vmatpush3.bf16.msra.mxu1 %v439_v41 }
  0x52   :  { %414 = vmatpush3.bf16.msra.mxu0 %v411_v38  ;;  %444 = vmatprep.subr.bf16.mxu1 %v443_v45 }
  0x53   :  { %416 = vmatprep.subr.bf16.mxu0 %v415_v44 }
  0x55   :  { %446 = vmatpush3.bf16.msra.mxu1 %v443_v45 }
  0x56   :  { %418 = vmatpush3.bf16.msra.mxu0 %v415_v44  ;;  %448 = vmatprep.subr.bf16.mxu1 %v447_v48 }
  0x59   :  { %350 = vmatmul.mubr.f32.vlgmr.msra.gmra.mrb[0].mxu0 %v64_v49  ;;  %450 = vmatpush3.bf16.msra.mxu1 %v447_v48 }
 0x12c   :  { %v351_v50 = vpop.f32.mrb[0].mxu0 }
 0x12d   :  { %v147_v51 = vpop.f32.mrb[1].mxu0 }
 0x12e   :  { %384 = vmatprep.mubr.f32.mxu1 %v147_v51 }
 0x12f   :  { %385 = vmatmul.mubr.f32.vlgmr.msra.gmra.mrb[0].mxu1 %v351_v50 }
 0x202   :  { %v386_v53 = vpop.f32.mrb[0].mxu1 }
 0x203   :  { %v257_v54 = vadd.f32 %v386_v53, %v280_v52  ;;  %v251_v55 = vpop.f32.mrb[1].mxu1 }
 0x204   :  { %v252_v56 = vadd.f32 %v280_v52, %v251_v55 }
 0x205   :  { %261 = vst [vmem:[#allocation9 + $0x8] sm:$0xff] %v257_v54 }
 0x206   :  { %260 = vst [vmem:[#allocation9] sm:$0xff] %v252_v56 }
 0x207   :  { %534 = shalt.err (!%p531_p0)
}
 0x208   :  { %s535_s3 = scalar_lea.hbm %s656_s4, 256 }
 0x209   :  { %p536_p1 = scmp.ne.s32.totalorder %s656_s4, %s535_s3  ;;  %p539_p2 = scmp.lt.u32.totalorder %s535_s3, %s656_s4 }
 0x20b   :  { %p541_p3 = pnand %p539_p2, %p536_p1 }
 0x20d   :  { %544 = shalt.err (!%p541_p3)
}
 0x20e   :  { %273 = dma.vmem_to_hbm [thread:$0]  %s268_s29, 256, %s656_s4, [#allocation5], %s553_s27, %s553_s27, %s554_s28  }
 0x20f   :  { %549 = dma.done.wait [#allocation5], 256  }
 0x210   :  { %550 = vsyncadd [#allocation5], 4294967040 }
 0x211   :  { %277 = vsyncpa [#allocation4], 1 }
 0x212   :  { %278 = vsyncpa [#allocation7], 1 }
 0x213   :  { %279 = vsyncpa [#allocation5], 1 }

</bundles_post_ra>
